<compile_context>
chip_gen: v7x
topology: tpu7x:2x2x1
jax: 0.10.0
libtpu: 0.0.40
codegen_flags: <defaults>
</compile_context>

<pallas_src>
import functools

import jax
import jax.numpy as jnp
from jax import lax
from jax.experimental import pallas as pl
from jax.experimental.pallas import tpu as pltpu

NEG_SLOPE = 0.01


def _cdiv(a, b):
    return -(-a // b)


def _round_up(a, b):
    return _cdiv(a, b) * b


def _conv_s2d_lrelu_kernel(z_ref, w_ref, b_ref, o_ref, *, tap_offsets, tm):
    """One row-tile of the stride-1 (kz x kz) conv over the space-to-depth input.

    z_ref : (1, Rw, Cz)        bf16  row-window (with halo) of the flattened s2d act.
    w_ref : (kz*kz, Cz, Cout)  bf16  per-tap weight matrices (VMEM resident)
    b_ref : (1, Cout)          f32
    o_ref : (1, tm, Cout)      f32
    """
    acc = None
    for t, off in enumerate(tap_offsets):      # static unroll over kz*kz = 9 taps
        lhs = z_ref[0, off:off + tm, :]        # (tm, Cz) bf16, contiguous slice
        part = jnp.dot(lhs, w_ref[t], preferred_element_type=jnp.float32)
        acc = part if acc is None else acc + part
    acc = acc + b_ref[...]                     # f32 epilogue: bias + LeakyReLU
    o_ref[0] = jnp.where(acc >= 0, acc, NEG_SLOPE * acc).astype(o_ref.dtype)


def conv_snl_relu(x_nchw, weight, bias, *, ks=5, pad=2, s=2, tm=512):
    """Forward pass of ConvSNLRelu (spec=False): Conv2d(ks,pad,stride=s) + LeakyReLU."""
    N, Cin, H, W = x_nchw.shape
    Cout = weight.shape[0]
    Ho = (H + 2 * pad - ks) // s + 1
    Wo = (W + 2 * pad - ks) // s + 1

    kz = _cdiv(ks, s)              # taps per dim after space-to-depth (3 for ks=5,s=2)
    Cz = s * s * Cin               # s2d channel depth
    Hz = _cdiv(H + 2 * pad, s)
    Wz = _cdiv(W + 2 * pad, s)
    # The kz x kz stride-1 windows over z always fit (holds for any H,W with these params).
    assert Ho + kz - 1 <= Hz and Wo + kz - 1 <= Wz

    # ---- activation repack: NCHW -> padded NHWC -> space-to-depth -> flat rows (bf16) ----
    x = x_nchw.astype(jnp.bfloat16)
    x = jnp.transpose(x, (0, 2, 3, 1))                                  # NHWC
    x = jnp.pad(x, ((0, 0),
                    (pad, s * Hz - H - pad),
                    (pad, s * Wz - W - pad),
                    (0, 0)))                                            # (N, s*Hz, s*Wz, Cin)
    z = x.reshape(N, Hz, s, Wz, s, Cin)
    z = jnp.transpose(z, (0, 1, 3, 2, 4, 5)).reshape(N, Hz, Wz, Cz)     # chan = (di, dj, ci)
    zf = z.reshape(N, Hz * Wz, Cz)                                      # flattened spatial

    # ---- row tiling over "virtual" output rows m = oh*Wz + ow_v (ow_v < Wo are valid) ----
    Mv = Ho * Wz                                   # virtual rows per image
    tm_eff = max(8, min(tm, _round_up(Mv, 8)))     # big tiles; clamp for small inputs
    T = _cdiv(Mv, tm_eff)                          # row tiles per image (no divisibility req.)
    halo = (kz - 1) * (Wz + 1)                     # extra rows needed by the 9 taps
    Rw = _round_up(tm_eff + halo, 16)              # streamed window rows (sublane aligned)
    r_need = (T - 1) * tm_eff + Rw
    zf = jnp.pad(zf, ((0, 0), (0, max(0, r_need - Hz * Wz)), (0, 0)))

    # Materialize overlapping row windows once (halo/tm ~ few %), so the kernel's
    # streamed input is a plain Blocked spec and gets the automatic double-buffered pipeline.
    row_idx = jnp.arange(T)[:, None] * tm_eff + jnp.arange(Rw)[None, :]
    zt = zf[:, row_idx, :].reshape(N * T, Rw, Cz)                       # (G, Rw, Cz) bf16

    # ---- weights: (Cout,Cin,ks,ks) -> zero-pad taps to kz*s -> (kz*kz, Cz, Cout) bf16 ----
    wq = weight.astype(jnp.bfloat16)
    wq = jnp.pad(wq, ((0, 0), (0, 0), (0, kz * s - ks), (0, kz * s - ks)))
    w9 = wq.reshape(Cout, Cin, kz, s, kz, s)
    w9 = jnp.transpose(w9, (2, 4, 3, 5, 1, 0)).reshape(kz * kz, Cz, Cout)
    b_row = bias.reshape(1, Cout).astype(jnp.float32)

    # ---- VMEM budget (double-buffered blocks, lane/sublane padded).  Must stay well
    # under the 32 MiB scoped default and v7x's 64 MiB physical VMEM. ----
    vmem_est = (2 * _round_up(Rw, 16) * _round_up(Cz, 128) * 2            # zt block (bf16)
                + 2 * _round_up(tm_eff, 8) * _round_up(Cout, 128) * 4     # out block (f32)
                + 2 * kz * kz * _round_up(Cz, 16) * _round_up(Cout, 128) * 2  # weights
                + _round_up(tm_eff, 8) * _round_up(Cout, 128) * 4)        # f32 accumulator
    assert vmem_est < 24 * 1024 * 1024, "row tile too large for VMEM; lower tm"

    tap_offsets = tuple(a * Wz + b for a in range(kz) for b in range(kz))
    kernel = functools.partial(_conv_s2d_lrelu_kernel,
                               tap_offsets=tap_offsets, tm=tm_eff)

    G = N * T
    out = pl.pallas_call(
        kernel,
        out_shape=jax.ShapeDtypeStruct((G, tm_eff, Cout), jnp.float32),
        grid_spec=pltpu.PrefetchScalarGridSpec(
            num_scalar_prefetch=0,
            grid=(G,),
            in_specs=[
                pl.BlockSpec((1, Rw, Cz), lambda g: (g, 0, 0)),            # streamed act rows
                pl.BlockSpec((kz * kz, Cz, Cout), lambda g: (0, 0, 0)),    # weights (resident)
                pl.BlockSpec((1, Cout), lambda g: (0, 0)),                 # bias (resident)
            ],
            out_specs=pl.BlockSpec((1, tm_eff, Cout), lambda g: (g, 0, 0)),
        ),
        compiler_params=pltpu.CompilerParams(
            dimension_semantics=("parallel",)),   # shards across v7x's 2 TensorCores
    )(zt, w9, b_row)

    # (G, tm, Cout) -> valid rows -> (N, Ho, Wz, Cout) -> drop garbage cols -> NCHW
    y = out.reshape(N, T * tm_eff, Cout)[:, :Mv, :]
    y = y.reshape(N, Ho, Wz, Cout)[:, :, :Wo, :]
    return jnp.transpose(y, (0, 3, 1, 2))


if __name__ == "__main__":
    key = jax.random.PRNGKey(0)
    k_x, k_w, k_b = jax.random.split(key, 3)

    # Small shapes consistent with the module.
    N, Cin, H, W = 2, 4, 16, 16
    Cout, ks, pad, s = 8, 5, 2, 2

    x = jax.random.normal(k_x, (N, Cin, H, W), dtype=jnp.float32)

    # Deterministic Conv2d-style init (uniform in +/- 1/sqrt(fan_in)).
    fan_in = Cin * ks * ks
    bound = 1.0 / (fan_in ** 0.5)
    weight = jax.random.uniform(k_w, (Cout, Cin, ks, ks),
                                minval=-bound, maxval=bound, dtype=jnp.float32)
    bias = jax.random.uniform(k_b, (Cout,),
                              minval=-bound, maxval=bound, dtype=jnp.float32)

    y = conv_snl_relu(x, weight, bias, ks=ks, pad=pad, s=s)
    y = jax.block_until_ready(y)

    # Reference on the same bf16-rounded operands (the kernel streams bf16 and
    # accumulates in f32), so the only difference is f32 accumulation order.
    xq = x.astype(jnp.bfloat16).astype(jnp.float32)
    wq = weight.astype(jnp.bfloat16).astype(jnp.float32)
    ref = lax.conv_general_dilated(
        xq, wq, window_strides=(s, s),
        padding=((pad, pad), (pad, pad)),
        dimension_numbers=("NCHW", "OIHW", "NCHW"))
    ref = ref + bias[None, :, None, None]
    ref = jnp.where(ref >= 0, ref, NEG_SLOPE * ref)

    Ho = (H + 2 * pad - ks) // s + 1
    Wo = (W + 2 * pad - ks) // s + 1
    assert y.shape == (N, Cout, Ho, Wo)
    assert jnp.allclose(y, ref, atol=1e-3, rtol=1e-3), "mismatch vs reference"
    print("KERNEL_OK")
</pallas_src>

<mosaic_0001>
module attributes {stable_mosaic.version = 11 : i64} {
  func.func @_conv_s2d_lrelu_kernel(%arg0: i32, %arg1: memref<1x112x16xbf16, #tpu.memory_space<vmem>>, %arg2: memref<9x16x8xbf16, #tpu.memory_space<vmem>>, %arg3: memref<1x8xf32, #tpu.memory_space<vmem>>, %arg4: memref<1x80x8xf32, #tpu.memory_space<vmem>>) attributes {dimension_semantics = [#tpu.dimension_semantics<parallel>], iteration_bounds = array<i64: 2>, scalar_prefetch = 0 : i64, scratch_operands = 0 : i64, tpu.core_type = #tpu.core_type<tc>, window_params = [{transform_indices = @transform_0, window_bounds = array<i64: 1, 112, 16>}, {pipeline_mode = #tpu.pipeline_mode<synchronous>, transform_indices = @transform_1, window_bounds = array<i64: 9, 16, 8>}, {pipeline_mode = #tpu.pipeline_mode<synchronous>, transform_indices = @transform_2, window_bounds = array<i64: 1, 8>}, {transform_indices = @transform_3, window_bounds = array<i64: 1, 80, 8>}]} {
    %c0 = arith.constant 0 : index
    %c0_0 = arith.constant 0 : index
    %c0_1 = arith.constant 0 : index
    %0 = vector.load %arg1[%c0, %c0_0, %c0_1] : memref<1x112x16xbf16, #tpu.memory_space<vmem>>, vector<1x80x16xbf16>
    %1 = vector.shape_cast %0 : vector<1x80x16xbf16> to vector<80x16xbf16>
    %c0_2 = arith.constant 0 : index
    %c0_3 = arith.constant 0 : index
    %c0_4 = arith.constant 0 : index
    %2 = vector.load %arg2[%c0_2, %c0_3, %c0_4] : memref<9x16x8xbf16, #tpu.memory_space<vmem>>, vector<1x16x8xbf16>
    %3 = vector.shape_cast %2 : vector<1x16x8xbf16> to vector<16x8xbf16>
    %cst = arith.constant dense<0.000000e+00> : vector<80x8xf32>
    %4 = tpu.matmul %1, %3, %cst {dimension_numbers = #tpu.dot_dimension_numbers<[1], [0], [0], [1], [0, 0, 1, 1], [], []>} : vector<80x16xbf16>, vector<16x8xbf16>, vector<80x8xf32> -> vector<80x8xf32>
    %c0_5 = arith.constant 0 : index
    %c1 = arith.constant 1 : index
    %c0_6 = arith.constant 0 : index
    %5 = vector.load %arg1[%c0_5, %c1, %c0_6] : memref<1x112x16xbf16, #tpu.memory_space<vmem>>, vector<1x80x16xbf16>
    %6 = vector.shape_cast %5 : vector<1x80x16xbf16> to vector<80x16xbf16>
    %c1_7 = arith.constant 1 : index
    %c0_8 = arith.constant 0 : index
    %c0_9 = arith.constant 0 : index
    %7 = vector.load %arg2[%c1_7, %c0_8, %c0_9] : memref<9x16x8xbf16, #tpu.memory_space<vmem>>, vector<1x16x8xbf16>
    %8 = vector.shape_cast %7 : vector<1x16x8xbf16> to vector<16x8xbf16>
    %cst_10 = arith.constant dense<0.000000e+00> : vector<80x8xf32>
    %9 = tpu.matmul %6, %8, %cst_10 {dimension_numbers = #tpu.dot_dimension_numbers<[1], [0], [0], [1], [0, 0, 1, 1], [], []>} : vector<80x16xbf16>, vector<16x8xbf16>, vector<80x8xf32> -> vector<80x8xf32>
    %10 = arith.addf %4, %9 : vector<80x8xf32>
    %c0_11 = arith.constant 0 : index
    %c2 = arith.constant 2 : index
    %c0_12 = arith.constant 0 : index
    %11 = vector.load %arg1[%c0_11, %c2, %c0_12] : memref<1x112x16xbf16, #tpu.memory_space<vmem>>, vector<1x80x16xbf16>
    %12 = vector.shape_cast %11 : vector<1x80x16xbf16> to vector<80x16xbf16>
    %c2_13 = arith.constant 2 : index
    %c0_14 = arith.constant 0 : index
    %c0_15 = arith.constant 0 : index
    %13 = vector.load %arg2[%c2_13, %c0_14, %c0_15] : memref<9x16x8xbf16, #tpu.memory_space<vmem>>, vector<1x16x8xbf16>
    %14 = vector.shape_cast %13 : vector<1x16x8xbf16> to vector<16x8xbf16>
    %cst_16 = arith.constant dense<0.000000e+00> : vector<80x8xf32>
    %15 = tpu.matmul %12, %14, %cst_16 {dimension_numbers = #tpu.dot_dimension_numbers<[1], [0], [0], [1], [0, 0, 1, 1], [], []>} : vector<80x16xbf16>, vector<16x8xbf16>, vector<80x8xf32> -> vector<80x8xf32>
    %16 = arith.addf %10, %15 : vector<80x8xf32>
    %c0_17 = arith.constant 0 : index
    %c10 = arith.constant 10 : index
    %c0_18 = arith.constant 0 : index
    %17 = vector.load %arg1[%c0_17, %c10, %c0_18] : memref<1x112x16xbf16, #tpu.memory_space<vmem>>, vector<1x80x16xbf16>
    %18 = vector.shape_cast %17 : vector<1x80x16xbf16> to vector<80x16xbf16>
    %c3 = arith.constant 3 : index
    %c0_19 = arith.constant 0 : index
    %c0_20 = arith.constant 0 : index
    %19 = vector.load %arg2[%c3, %c0_19, %c0_20] : memref<9x16x8xbf16, #tpu.memory_space<vmem>>, vector<1x16x8xbf16>
    %20 = vector.shape_cast %19 : vector<1x16x8xbf16> to vector<16x8xbf16>
    %cst_21 = arith.constant dense<0.000000e+00> : vector<80x8xf32>
    %21 = tpu.matmul %18, %20, %cst_21 {dimension_numbers = #tpu.dot_dimension_numbers<[1], [0], [0], [1], [0, 0, 1, 1], [], []>} : vector<80x16xbf16>, vector<16x8xbf16>, vector<80x8xf32> -> vector<80x8xf32>
    %22 = arith.addf %16, %21 : vector<80x8xf32>
    %c0_22 = arith.constant 0 : index
    %c11 = arith.constant 11 : index
    %c0_23 = arith.constant 0 : index
    %23 = vector.load %arg1[%c0_22, %c11, %c0_23] : memref<1x112x16xbf16, #tpu.memory_space<vmem>>, vector<1x80x16xbf16>
    %24 = vector.shape_cast %23 : vector<1x80x16xbf16> to vector<80x16xbf16>
    %c4 = arith.constant 4 : index
    %c0_24 = arith.constant 0 : index
    %c0_25 = arith.constant 0 : index
    %25 = vector.load %arg2[%c4, %c0_24, %c0_25] : memref<9x16x8xbf16, #tpu.memory_space<vmem>>, vector<1x16x8xbf16>
    %26 = vector.shape_cast %25 : vector<1x16x8xbf16> to vector<16x8xbf16>
    %cst_26 = arith.constant dense<0.000000e+00> : vector<80x8xf32>
    %27 = tpu.matmul %24, %26, %cst_26 {dimension_numbers = #tpu.dot_dimension_numbers<[1], [0], [0], [1], [0, 0, 1, 1], [], []>} : vector<80x16xbf16>, vector<16x8xbf16>, vector<80x8xf32> -> vector<80x8xf32>
    %28 = arith.addf %22, %27 : vector<80x8xf32>
    %c0_27 = arith.constant 0 : index
    %c12 = arith.constant 12 : index
    %c0_28 = arith.constant 0 : index
    %29 = vector.load %arg1[%c0_27, %c12, %c0_28] : memref<1x112x16xbf16, #tpu.memory_space<vmem>>, vector<1x80x16xbf16>
    %30 = vector.shape_cast %29 : vector<1x80x16xbf16> to vector<80x16xbf16>
    %c5 = arith.constant 5 : index
    %c0_29 = arith.constant 0 : index
    %c0_30 = arith.constant 0 : index
    %31 = vector.load %arg2[%c5, %c0_29, %c0_30] : memref<9x16x8xbf16, #tpu.memory_space<vmem>>, vector<1x16x8xbf16>
    %32 = vector.shape_cast %31 : vector<1x16x8xbf16> to vector<16x8xbf16>
    %cst_31 = arith.constant dense<0.000000e+00> : vector<80x8xf32>
    %33 = tpu.matmul %30, %32, %cst_31 {dimension_numbers = #tpu.dot_dimension_numbers<[1], [0], [0], [1], [0, 0, 1, 1], [], []>} : vector<80x16xbf16>, vector<16x8xbf16>, vector<80x8xf32> -> vector<80x8xf32>
    %34 = arith.addf %28, %33 : vector<80x8xf32>
    %c0_32 = arith.constant 0 : index
    %c20 = arith.constant 20 : index
    %c0_33 = arith.constant 0 : index
    %35 = vector.load %arg1[%c0_32, %c20, %c0_33] : memref<1x112x16xbf16, #tpu.memory_space<vmem>>, vector<1x80x16xbf16>
    %36 = vector.shape_cast %35 : vector<1x80x16xbf16> to vector<80x16xbf16>
    %c6 = arith.constant 6 : index
    %c0_34 = arith.constant 0 : index
    %c0_35 = arith.constant 0 : index
    %37 = vector.load %arg2[%c6, %c0_34, %c0_35] : memref<9x16x8xbf16, #tpu.memory_space<vmem>>, vector<1x16x8xbf16>
    %38 = vector.shape_cast %37 : vector<1x16x8xbf16> to vector<16x8xbf16>
    %cst_36 = arith.constant dense<0.000000e+00> : vector<80x8xf32>
    %39 = tpu.matmul %36, %38, %cst_36 {dimension_numbers = #tpu.dot_dimension_numbers<[1], [0], [0], [1], [0, 0, 1, 1], [], []>} : vector<80x16xbf16>, vector<16x8xbf16>, vector<80x8xf32> -> vector<80x8xf32>
    %40 = arith.addf %34, %39 : vector<80x8xf32>
    %c0_37 = arith.constant 0 : index
    %c21 = arith.constant 21 : index
    %c0_38 = arith.constant 0 : index
    %41 = vector.load %arg1[%c0_37, %c21, %c0_38] : memref<1x112x16xbf16, #tpu.memory_space<vmem>>, vector<1x80x16xbf16>
    %42 = vector.shape_cast %41 : vector<1x80x16xbf16> to vector<80x16xbf16>
    %c7 = arith.constant 7 : index
    %c0_39 = arith.constant 0 : index
    %c0_40 = arith.constant 0 : index
    %43 = vector.load %arg2[%c7, %c0_39, %c0_40] : memref<9x16x8xbf16, #tpu.memory_space<vmem>>, vector<1x16x8xbf16>
    %44 = vector.shape_cast %43 : vector<1x16x8xbf16> to vector<16x8xbf16>
    %cst_41 = arith.constant dense<0.000000e+00> : vector<80x8xf32>
    %45 = tpu.matmul %42, %44, %cst_41 {dimension_numbers = #tpu.dot_dimension_numbers<[1], [0], [0], [1], [0, 0, 1, 1], [], []>} : vector<80x16xbf16>, vector<16x8xbf16>, vector<80x8xf32> -> vector<80x8xf32>
    %46 = arith.addf %40, %45 : vector<80x8xf32>
    %c0_42 = arith.constant 0 : index
    %c22 = arith.constant 22 : index
    %c0_43 = arith.constant 0 : index
    %47 = vector.load %arg1[%c0_42, %c22, %c0_43] : memref<1x112x16xbf16, #tpu.memory_space<vmem>>, vector<1x80x16xbf16>
    %48 = vector.shape_cast %47 : vector<1x80x16xbf16> to vector<80x16xbf16>
    %c8 = arith.constant 8 : index
    %c0_44 = arith.constant 0 : index
    %c0_45 = arith.constant 0 : index
    %49 = vector.load %arg2[%c8, %c0_44, %c0_45] : memref<9x16x8xbf16, #tpu.memory_space<vmem>>, vector<1x16x8xbf16>
    %50 = vector.shape_cast %49 : vector<1x16x8xbf16> to vector<16x8xbf16>
    %cst_46 = arith.constant dense<0.000000e+00> : vector<80x8xf32>
    %51 = tpu.matmul %48, %50, %cst_46 {dimension_numbers = #tpu.dot_dimension_numbers<[1], [0], [0], [1], [0, 0, 1, 1], [], []>} : vector<80x16xbf16>, vector<16x8xbf16>, vector<80x8xf32> -> vector<80x8xf32>
    %52 = arith.addf %46, %51 : vector<80x8xf32>
    %c0_47 = arith.constant 0 : index
    %c0_48 = arith.constant 0 : index
    %53 = vector.load %arg3[%c0_47, %c0_48] : memref<1x8xf32, #tpu.memory_space<vmem>>, vector<1x8xf32>
    %54 = vector.broadcast %53 : vector<1x8xf32> to vector<80x8xf32>
    %55 = arith.addf %52, %54 : vector<80x8xf32>
    %cst_49 = arith.constant 0.000000e+00 : f32
    %56 = vector.broadcast %cst_49 : f32 to vector<80x8xf32>
    %57 = arith.cmpf oge, %55, %56 : vector<80x8xf32>
    %cst_50 = arith.constant 0.00999999977 : f32
    %58 = vector.broadcast %cst_50 : f32 to vector<80x8xf32>
    %59 = arith.mulf %58, %55 : vector<80x8xf32>
    %60 = arith.select %57, %55, %59 : vector<80x8xi1>, vector<80x8xf32>
    %c0_51 = arith.constant 0 : index
    %c0_52 = arith.constant 0 : index
    %c0_53 = arith.constant 0 : index
    %61 = vector.load %arg4[%c0_51, %c0_52, %c0_53] : memref<1x80x8xf32, #tpu.memory_space<vmem>>, vector<1x80x8xf32>
    %62 = vector.shape_cast %61 : vector<1x80x8xf32> to vector<80x8xf32>
    %63 = vector.shape_cast %60 : vector<80x8xf32> to vector<1x80x8xf32>
    tpu.vector_store %arg4[%c0_51, %c0_52, %c0_53], %63 {strides = array<i32>} : memref<1x80x8xf32, #tpu.memory_space<vmem>>, vector<1x80x8xf32>,
    return
  }
  func.func @transform_0(%arg0: i32) -> (i32, i32, i32) {
    %c0_i32 = arith.constant 0 : i32
    %c0_i32_0 = arith.constant 0 : i32
    %c0_i32_1 = arith.constant 0 : i32
    return %arg0, %c0_i32, %c0_i32_0 : i32, i32, i32
  }
  func.func @transform_1(%arg0: i32) -> (i32, i32, i32) {
    %c0_i32 = arith.constant 0 : i32
    %c0_i32_0 = arith.constant 0 : i32
    %c0_i32_1 = arith.constant 0 : i32
    %c0_i32_2 = arith.constant 0 : i32
    return %c0_i32, %c0_i32_0, %c0_i32_1 : i32, i32, i32
  }
  func.func @transform_2(%arg0: i32) -> (i32, i32) {
    %c0_i32 = arith.constant 0 : i32
    %c0_i32_0 = arith.constant 0 : i32
    %c0_i32_1 = arith.constant 0 : i32
    return %c0_i32, %c0_i32_0 : i32, i32
  }
  func.func @transform_3(%arg0: i32) -> (i32, i32, i32) {
    %c0_i32 = arith.constant 0 : i32
    %c0_i32_0 = arith.constant 0 : i32
    %c0_i32_1 = arith.constant 0 : i32
    return %arg0, %c0_i32, %c0_i32_0 : i32, i32, i32
  }
}

</mosaic_0001>

<bundles_post_ra>
// kernel: tpu_custom_call.1
= control target key start
LH: loop header
LB: loop body
LE: loop exit
PB: predicated region body
PF: predicated region fallthrough
CT: control target
= control target key end

     0   :  { %s2002_s12 = smov 0   ;;  %s2414_s0 = inlined_call_operand.vmem [shape: bf16[2,112,16], index: 0, kind: input, shape index: {}]   ;;  %s2415_s1 = inlined_call_operand.vmem [shape: bf16[9,16,8], index: 1, kind: input, shape index: {}]   ;;  %s2416_s2 = inlined_call_operand.vmem [shape: f32[1,8], index: 2, kind: input, shape index: {}]   ;;  %s2417_s3 = inlined_call_operand.vmem [shape: f32[2,80,8], index: 3, kind: output, shape index: {}]  }
   0x1 LB: > { %s1571_s13 = sadd.s32 4294967295, %s1978_s12   ;;  %p1575_p0 = scmp.ge.s32.totalorder %s1978_s12, 1  ;;  %s1978_s12 = sphi %s2002_s12, %s13_s12  }
   0x2   : > { %p137_p1 = scmp.lt.s32.totalorder %s1978_s12, 3 }
   0x4   : > { %p138_p2 = pnand %p1575_p0, %p137_p1 }
   0x5   : > { %v1940_v0 = vld [vmem:[%s2415_s1 + $0x8] sm:$0xff] (!%p138_p2)   ;;  %v1980_v1 = vmov (!%p138_p2), 0.0   ;;  %p161_p3 = scmp.lt.s32.totalorder (!%p138_p2), %s1571_s13, 1  ;;  %vm1981_vm0 = vmmov (!%p138_p2), 0   ;;  %vm216_vm1 = vsmask.f32 (!%p138_p2), 7424 }
   0x6   : > { %141 = sbr.rel (%p138_p2) target bundleno = 425 (0x1a9), region = 32  ;;  %1728 = vmatprep.subr.bf16.mxu0 (!%p138_p2), %v1980_v1  ;;  %1926 = vmatprep.subr.bf16.mxu1 (!%p138_p2), %v1980_v1  ;;  %vm267_vm2 = vcmask (!%p138_p2), 130048   ;;  %v1945_v20 = vld [vmem:[%s2415_s1 + $0x10] sm:$0xff] (!%p138_p2)   ;;  %v1946_v24 = vld [vmem:[%s2415_s1] sm:$0xff] (!%p138_p2)   ;;  %vm452_vm3 = vcmask (!%p138_p2), 1046528   ;;  %v1949_v46 = vld [vmem:[%s2415_s1 + $0x18] sm:$0xff] (!%p138_p2)  }
   0x7   : > { %1729 = vmatpush3.bf16.msra.mxu0 (!%p138_p2), %v1940_v0  ;;  %1927 = vmatpush3.bf16.msra.mxu1 (!%p138_p2), %v1940_v0  ;;  %v1951_v50 = vld [vmem:[%s2415_s1 + $0x20] sm:$0xff] (!%p138_p2)   ;;  %vm732_vm4 = vsmask.f32 (!%p138_p2), 6400  ;;  %vm897_vm5 = vcmask (!%p138_p2), 1045504   ;;  %vm1177_vm6 = vsmask.f32 (!%p138_p2), 5376 }
   0x8   : > { %1730 = vmatprep.mubr.msk.bf16.mxu0 (!%p138_p2), %vm1981_vm0, %v1980_v1  ;;  %1742 = vmatprep.mubr.msk.bf16.mxu1 (!%p138_p2), %vm1981_vm0, %v1980_v1  ;;  %vm1342_vm7 = vcmask (!%p138_p2), 1044480   ;;  %vm1505_vm8 = vcmask (!%p138_p2), 64512  }
   0x9   : > { %1772 = vmatprep.subr.bf16.mxu0 (!%p138_p2), %v1980_v1  ;;  %1750 = vmatprep.subr.bf16.mxu1 (!%p138_p2), %v1980_v1 }
   0xd   : > { %s2419_s13 = smov (!%p161_p3, %s1571_s13), 1 }
   0xe   : > { %s1928_s16 = smul.u32 56, %s2419_s13 }
   0xf   : > { %s1929_s11 = smul.u32 80, %s2419_s13 }
  0x10   : > { %s2027_s19 = scalar_lea.vmem %s2414_s0, %s1928_s16 }
  0x11   : > { %v172_v2 = vld [vmem:[%s2027_s19] sm:$0xf]  ;;  %v173_v3 = vld [vmem:[%s2027_s19 + $0x4] sm:$0xf]  ;;  %v2032_v5 = vld [vmem:[%s2027_s19 + $0x8] sm:$0xff]   ;;  %s2374_s16 = scalar_lea.vmem %s2417_s3, %s1929_s11 }
  0x12   : > { %v1580_v4 = vcombine.low %v172_v2, %v173_v3  ;;  %v225_v8 = vshll.u32 %v2032_v5, 16  ;;  %v2036_v9 = vld [vmem:[%s2027_s19 + $0x18] sm:$0xff]   ;;  %v2039_v10 = vld [vmem:[%s2027_s19 + $0x20] sm:$0xff]   ;;  %v2042_v11 = vld [vmem:[%s2027_s19 + $0x10] sm:$0xff]   ;;  %v229_v21 = vshrl.u32 %v2032_v5, 16  ;;  %v454_v48 = vrot.slane %v2032_v5, 1 }
  0x13   : > { %v241_v14 = vshll.u32 %v2036_v9, 16  ;;  %v245_v15 = vshrl.u32 %v2036_v9, 16  ;;  %v249_v16 = vshll.u32 %v2039_v10, 16  ;;  %v2048_v17 = vld [vmem:[%s2027_s19 + $0x28] ss:$0 sps:$4 sm:$0x11]  }
  0x14   : > { %v218_v6 = vshrl.u32 %v1580_v4, 16  ;;  %v220_v7 = vshll.u32 %v1580_v4, 16  ;;  %v227_v13 = vrot.slane %v225_v8, 1  ;;  %v233_v22 = vshll.u32 %v2042_v11, 16  ;;  %v2073_v36 = vld [vmem:[%s2027_s19 + $0x24] sm:$0xff]   ;;  %v2140_v60 = vld [vmem:[%s2027_s19 + $0xc] sm:$0xff]  }
  0x15   : > { %v243_v19 = vrot.slane %v241_v14, 1  ;;  %v251_v23 = vrot.slane %v249_v16, 1  ;;  %v253_v27 = vshrl.u32 %v2039_v10, 16  ;;  %v257_v28 = vshll.u32 %v2048_v17, 16  ;;  %v445_v40 = vld [vmem:[%s2027_s19] sm:$0xe] }
  0x16   : > { %v222_v12 = vrot.slane %v220_v7, 1  ;;  %v231_v30 = vor.u32 %v229_v21, %v227_v13  ;;  %v235_v31 = vrot.slane %v233_v22, 1  ;;  %v237_v35 = vshrl.u32 %v2042_v11, 16  ;;  %v1959_v37 = vld [vmem:[%s2027_s19 + $0x2c] ss:$0 sps:$4 sm:$0x11]  }
  0x17   : > { %v247_v26 = vor.u32 %v245_v15, %v243_v19  ;;  %v255_v32 = vor.u32 %v253_v27, %v251_v23  ;;  %v259_v33 = vrot.slane %v257_v28, 1  ;;  %v617_v41 = vrot.slane %v2073_v36, 1  ;;  %v568_v56 = vld [vmem:[%s2027_s19 + $0x4] sm:$0xe]  ;;  %v2135_v57 = vld [vmem:[%s2027_s19 + $0x8] sm:$0xf] }
  0x18   : > { %v223_v18 = vor.u32 %v222_v12, %v218_v6  ;;  %v236_v34 = vsel %vm216_vm1, %v231_v30, %v235_v31  ;;  %v239_v39 = vor.u32 %v237_v35, %v235_v31  ;;  %v619_v42 = vrot.slane %v1959_v37, 1  ;;  %v1954_v12 = vld [vmem:[%s2415_s1 + $0x28] sm:$0xff]  }
  0x19   : > { %v252_v29 = vsel %vm216_vm1, %v247_v26, %v251_v23  ;;  %v260_v38 = vsel %vm216_vm1, %v255_v32, %v259_v33  ;;  %v1600_v45 = vcombine.low %v445_v40, %v173_v3  ;;  %v456_v51 = vrot.slane %v2042_v11, 1  ;;  %v2177_v23 = vld [vmem:[%s2027_s19 + $0x1c] sm:$0xff]  }
  0x1a   : > { %v228_v25 = vsel %vm216_vm1, %v223_v18, %v227_v13  ;;  %1743 = vmatmul.mubr.msk.bf16.vlgmr.msra.gmra.mrb[0].mxu1 %vm267_vm2, %v252_v29  ;;  %v2088_v43 = vsel %vm452_vm3, %v617_v41, %v619_v42  ;;  %v244_v44 = vsel %vm216_vm1, %v239_v39, %v243_v19  ;;  %v458_v53 = vrot.slane %v2036_v9, 1  ;;  %v2159_v13 = vld [vmem:[%s2027_s19 + $0x14] sm:$0xff]   ;;  %v2201_v39 = vld [vmem:[%s2027_s19 + $0x2c] ss:$0 sps:$4 sm:$0x33]  }
  0x1b   : > { %1731 = vmatmul.mubr.msk.bf16.vlgmr.msra.gmra.mrb[0].mxu0 %vm267_vm2, %v228_v25  ;;  %1751 = vmatpush3.bf16.msra.mxu1 %v1946_v24  ;;  %v453_v47 = vrot.slane %v1600_v45, 1  ;;  %v457_v52 = vsel %vm452_vm3, %v454_v48, %v456_v51  ;;  %v460_v55 = vrot.slane %v2039_v10, 1  ;;  %v1609_v59 = vcombine.low %v568_v56, %v2135_v57  ;;  %v1956_v19 = vld [vmem:[%s2415_s1 + $0x30] sm:$0xff]  }
  0x1c   : > { %1773 = vmatpush3.bf16.msra.mxu0 %v1945_v20  ;;  %1734 = vmatprep.mubr.msk.bf16.mxu0 %vm1981_vm0, %v1980_v1  ;;  %v459_v54 = vsel %vm452_vm3, %v456_v51, %v458_v53  ;;  %v462_v61 = vrot.slane %v2048_v17, 1  ;;  %v742_v0 = vshrl.u32 %v2140_v60, 16  ;;  %v745_v2 = vshll.u32 %v2140_v60, 16  ;;  %v1013_v51 = vld [vmem:[%s2027_s19 + $0x8] sm:$0xc] }
  0x1d   : > { %1816 = vmatprep.subr.bf16.mxu0 %v1980_v1  ;;  %1746 = vmatprep.mubr.msk.bf16.mxu1 %vm1981_vm0, %v1980_v1  ;;  %v455_v49 = vsel %vm452_vm3, %v453_v47, %v454_v48  ;;  %v461_v58 = vsel %vm452_vm3, %v458_v53, %v460_v55  ;;  %v734_v62 = vshrl.u32 %v1609_v59, 16  ;;  %v737_v63 = vshll.u32 %v1609_v59, 16 }
  0x1e   : > { %1794 = vmatprep.subr.bf16.mxu1 %v1980_v1  ;;  %v610_v3 = vrot.slane %v1609_v59, 1  ;;  %v744_v8 = vrot.slane %v742_v0, 1  ;;  %v751_v15 = vshrl.u32 %v2159_v13, 16  ;;  %v754_v16 = vshll.u32 %v2159_v13, 16  ;;  %v2251_v0 = vld [vmem:[%s2027_s19 + $0x18] sm:$0xff]  }
  0x1f   : > { %v736_v6 = vrot.slane %v734_v62, 1  ;;  %v739_v7 = vrot.slane %v737_v63, 2  ;;  %v613_v17 = vrot.slane %v2159_v13, 1  ;;  %v760_v25 = vshrl.u32 %v2177_v23, 16  ;;  %v1965_v63 = vld [vmem:[%s2415_s1 + $0x40] sm:$0xff]  }
  0x20   : > { %v753_v20 = vrot.slane %v751_v15, 1  ;;  %v756_v21 = vrot.slane %v754_v16, 2  ;;  %v763_v26 = vshll.u32 %v2177_v23, 16  ;;  %v615_v27 = vrot.slane %v2177_v23, 1 }
  0x21   : > { %v762_v29 = vrot.slane %v760_v25, 1  ;;  %v769_v33 = vshrl.u32 %v2073_v36, 16  ;;  %v781_v45 = vshll.u32 %v2201_v39, 16 }
  0x22   : > { %1747 = vmatmul.mubr.msk.bf16.gmra.mrb[4].mxu1 %vm267_vm2, %v260_v38  ;;  %v757_v24 = vor.u32 %v756_v21, %v753_v20  ;;  %v765_v30 = vrot.slane %v763_v26, 2  ;;  %v616_v31 = vsel %vm452_vm3, %v613_v17, %v615_v27  ;;  %v618_v40 = vsel %vm452_vm3, %v615_v27, %v617_v41  ;;  %v1335_v26 = vld [vmem:[%s2027_s19 + $0x8] sm:$0x8] }
  0x23   : > { %1735 = vmatmul.mubr.msk.bf16.gmra.mrb[4].mxu0 %vm267_vm2, %v236_v34  ;;  %1752 = vmatprep.mubr.msk.bf16.mxu1 %vm1981_vm0, %v1980_v1  ;;  %v772_v34 = vshll.u32 %v2073_v36, 16  ;;  %v771_v37 = vrot.slane %v769_v33, 1  ;;  %v783_v48 = vrot.slane %v781_v45, 2 }
  0x24   : > { %1738 = vmatprep.mubr.msk.bf16.mxu0 %vm1981_vm0, %v1980_v1  ;;  %v766_v32 = vor.u32 %v765_v30, %v762_v29  ;;  %v1196_v29 = vshrl.u32 %v2251_v0, 16  ;;  %v1199_v30 = vshll.u32 %v2251_v0, 16 }
  0x25   : > { %v774_v38 = vrot.slane %v772_v34, 2 }
  0x26   : > { %v767_v35 = vsel %vm732_vm4, %v757_v24, %v766_v32  ;;  %v1198_v34 = vrot.slane %v1196_v29, 2 }
  0x27   : > { %v775_v42 = vor.u32 %v774_v38, %v771_v37 }
  0x29   : > { %v776_v41 = vsel %vm732_vm4, %v766_v32, %v775_v42 }
  0x2a   : > { %1753 = vmatmul.mubr.msk.bf16.vlgmr.msra.gmra.mrb[8].mxu1 %vm267_vm2, %v1580_v4  ;;  %v611_v4 = vrot.slane %v2140_v60, 1 }
  0x2b   : > { %1739 = vmatmul.mubr.msk.bf16.gmra.mrb[8].mxu0 %vm267_vm2, %v244_v44  ;;  %1795 = vmatpush3.bf16.msra.mxu1 %v1949_v46  ;;  %v778_v44 = vshrl.u32 %v2201_v39, 16  ;;  %v890_v46 = vld [vmem:[%s2027_s19 + $0x4] sm:$0xc] }
  0x2c   : > { %1774 = vmatprep.mubr.msk.bf16.mxu0 %vm1981_vm0, %v1980_v1  ;;  %1756 = vmatprep.mubr.msk.bf16.mxu1 %vm1981_vm0, %v1980_v1  ;;  %v614_v22 = vsel %vm452_vm3, %v611_v4, %v613_v17 }
  0x2d   : > { %1838 = vmatprep.subr.bf16.mxu1 %v1980_v1  ;;  %v780_v47 = vrot.slane %v778_v44, 1 }
  0x32   : > { %1757 = vmatmul.mubr.msk.bf16.gmra.mrb[12].mxu1 %vm267_vm2, %v2032_v5  ;;  %v463_v5 = vsel %vm452_vm3, %v460_v55, %v462_v61  ;;  %v901_v61 = vrot.slane %v2159_v13, 2 }
  0x33   : > { %1775 = vmatmul.mubr.msk.bf16.vlgmr.msra.gmra.mrb[12].mxu0 %vm267_vm2, %v455_v49  ;;  %1760 = vmatprep.mubr.msk.bf16.mxu1 %vm1981_vm0, %v1980_v1  ;;  %v1632_v49 = vcombine.low %v890_v46, %v2135_v57  ;;  %v2232_v57 = vld [vmem:[%s2027_s19 + $0x10] sm:$0xff]  }
  0x34   : > { %1817 = vmatpush3.bf16.msra.mxu0 %v1951_v50  ;;  %1778 = vmatprep.mubr.msk.bf16.mxu0 %vm1981_vm0, %v1980_v1  ;;  %v784_v50 = vor.u32 %v783_v48, %v780_v47  ;;  %v1187_v16 = vshrl.u32 %v2232_v57, 16  ;;  %v1190_v17 = vshll.u32 %v2232_v57, 16  ;;  %v1344_v38 = vrot.slane %v2232_v57, 3 }
  0x35   : > { %1860 = vmatprep.subr.bf16.mxu0 %v1980_v1  ;;  %v898_v53 = vrot.slane %v1632_v49, 2  ;;  %v1346_v47 = vrot.slane %v2251_v0, 3 }
  0x36   : > { %v785_v55 = vsel %vm732_vm4, %v775_v42, %v784_v50 }
  0x3a   : > { %1761 = vmatmul.mubr.msk.bf16.gmra.mrb[16].mxu1 %vm267_vm2, %v2042_v11  ;;  %v612_v11 = vsel %vm452_vm3, %v610_v3, %v611_v4  ;;  %v1058_v3 = vrot.slane %v2251_v0, 2  ;;  %v903_v4 = vrot.slane %v2177_v23, 2  ;;  %v1189_v23 = vrot.slane %v1187_v16, 2 }
  0x3b   : > { %1779 = vmatmul.mubr.msk.bf16.gmra.mrb[16].mxu0 %vm267_vm2, %v457_v52  ;;  %1764 = vmatprep.mubr.msk.bf16.mxu1 %vm1981_vm0, %v1980_v1  ;;  %v2224_v52 = vld [vmem:[%s2027_s19 + $0xc] sm:$0xf] }
  0x3c   : > { %1782 = vmatprep.mubr.msk.bf16.mxu0 %vm1981_vm0, %v1980_v1  ;;  %v1641_v56 = vcombine.low %v1013_v51, %v2224_v52  ;;  %v1664_v32 = vcombine.low %v1335_v26, %v2224_v52  ;;  %v1347_v51 = vsel %vm1342_vm7, %v1344_v38, %v1346_v47 }
  0x3e   : > { %v1055_v59 = vrot.slane %v1641_v56, 2  ;;  %v1182_v15 = vshll.u32 %v1641_v56, 16  ;;  %v1343_v37 = vrot.slane %v1664_v32, 3 }
  0x40   : > { %v1345_v44 = vsel %vm1342_vm7, %v1343_v37, %v1344_v38 }
  0x42   : > { %1765 = vmatmul.mubr.msk.bf16.gmra.mrb[20].mxu1 %vm267_vm2, %v2036_v9  ;;  %v747_v9 = vrot.slane %v745_v2, 2 }
  0x43   : > { %1783 = vmatmul.mubr.msk.bf16.gmra.mrb[20].mxu0 %vm267_vm2, %v459_v54  ;;  %1768 = vmatprep.mubr.msk.bf16.mxu1 %vm1981_vm0, %v1980_v1  ;;  %v899_v54 = vrot.slane %v2140_v60, 2  ;;  %v1056_v60 = vrot.slane %v2232_v57, 2 }
  0x44   : > { %1786 = vmatprep.mubr.msk.bf16.mxu0 %vm1981_vm0, %v1980_v1  ;;  %v748_v14 = vor.u32 %v747_v9, %v744_v8  ;;  %v905_v9 = vrot.slane %v2073_v36, 2  ;;  %v1179_v36 = vshrl.u32 %v1641_v56, 16 }
  0x45   : > { %v1057_v62 = vsel %vm897_vm5, %v1055_v59, %v1056_v60  ;;  %v902_v2 = vsel %vm897_vm5, %v899_v54, %v901_v61 }
  0x46   : > { %v758_v28 = vsel %vm732_vm4, %v748_v14, %v757_v24  ;;  %v906_v13 = vsel %vm897_vm5, %v903_v4, %v905_v9  ;;  %v1181_v21 = vrot.slane %v1179_v36, 2  ;;  %v1192_v24 = vrot.slane %v1190_v17, 3 }
  0x4a   : > { %1769 = vmatmul.mubr.msk.bf16.gmra.mrb[24].mxu1 %vm267_vm2, %v2039_v10  ;;  %v740_v10 = vor.u32 %v739_v7, %v736_v6  ;;  %v2264_v6 = vld [vmem:[%s2027_s19 + $0x20] sm:$0xff]   ;;  %v904_v7 = vsel %vm897_vm5, %v901_v61, %v903_v4 }
  0x4b   : > { %1787 = vmatmul.mubr.msk.bf16.gmra.mrb[24].mxu0 %vm267_vm2, %v461_v58  ;;  %1796 = vmatprep.mubr.msk.bf16.mxu1 %vm1981_vm0, %v1980_v1  ;;  %v900_v58 = vsel %vm897_vm5, %v898_v53, %v899_v54  ;;  %v1060_v8 = vrot.slane %v2264_v6, 2  ;;  %v1208_v42 = vshll.u32 %v2264_v6, 16  ;;  %v1348_v56 = vrot.slane %v2264_v6, 3 }
  0x4c   : > { %1790 = vmatprep.mubr.msk.bf16.mxu0 %vm1981_vm0, %v1980_v1  ;;  %v749_v18 = vsel %vm732_vm4, %v740_v10, %v748_v14  ;;  %v907_v14 = vrot.slane %v2201_v39, 2 }
  0x4d   : > { %v1349_v59 = vsel %vm1342_vm7, %v1346_v47, %v1348_v56 }
  0x4e   : > { %v908_v20 = vsel %vm897_vm5, %v905_v9, %v907_v14 }
  0x52   : > { %1797 = vmatmul.mubr.msk.bf16.vlgmr.msra.gmra.mrb[28].mxu1 %vm267_vm2, %v612_v11  ;;  %v1061_v11 = vsel %vm897_vm5, %v1058_v3, %v1060_v8 }
  0x53   : > { %1791 = vmatmul.mubr.msk.bf16.gmra.mrb[28].mxu0 %vm267_vm2, %v463_v5  ;;  %1839 = vmatpush3.bf16.msra.mxu1 %v1954_v12  ;;  %v1059_v5 = vsel %vm897_vm5, %v1056_v60, %v1058_v3  ;;  %v2277_v12 = vld [vmem:[%s2027_s19 + $0x28] sm:$0xff]  }
  0x54   : > { %1818 = vmatprep.mubr.msk.bf16.mxu0 %vm1981_vm0, %v1980_v1  ;;  %1800 = vmatprep.mubr.msk.bf16.mxu1 %vm1981_vm0, %v1980_v1  ;;  %v1062_v10 = vrot.slane %v2277_v12, 2  ;;  %v1214_v49 = vshrl.u32 %v2277_v12, 16  ;;  %v1217_v50 = vshll.u32 %v2277_v12, 16 }
  0x55   : > { %1882 = vmatprep.subr.bf16.mxu1 %v1980_v1 }
  0x56   : > { %v1216_v53 = vrot.slane %v1214_v49, 2  ;;  %v1219_v54 = vrot.slane %v1217_v50, 3 }
  0x58   : > { %v1220_v57 = vor.u32 %v1219_v54, %v1216_v53 }
  0x5a   : > { %1801 = vmatmul.mubr.msk.bf16.gmra.mrb[32].mxu1 %vm267_vm2, %v614_v22  ;;  %v1184_v22 = vrot.slane %v1182_v15, 3 }
  0x5b   : > { %1819 = vmatmul.mubr.msk.bf16.vlgmr.msra.gmra.mrb[32].mxu0 %vm267_vm2, %v749_v18  ;;  %1804 = vmatprep.mubr.msk.bf16.mxu1 %vm1981_vm0, %v1980_v1  ;;  %v1063_v18 = vsel %vm897_vm5, %v1060_v8, %v1062_v10 }
  0x5c   : > { %1861 = vmatpush3.bf16.msra.mxu0 %v1956_v19  ;;  %1822 = vmatprep.mubr.msk.bf16.mxu0 %vm1981_vm0, %v1980_v1  ;;  %v1969_v19 = vld [vmem:[%s2027_s19 + $0x30] ss:$0 sps:$4 sm:$0x33]   ;;  %v1185_v27 = vor.u32 %v1184_v22, %v1181_v21 }
  0x5d   : > { %1904 = vmatprep.subr.bf16.mxu0 %v1980_v1  ;;  %v1064_v25 = vrot.slane %v1969_v19, 2 }
  0x62   : > { %1805 = vmatmul.mubr.msk.bf16.gmra.mrb[36].mxu1 %vm267_vm2, %v616_v31  ;;  %v1065_v31 = vsel %vm897_vm5, %v1062_v10, %v1064_v25 }
  0x63   : > { %1823 = vmatmul.mubr.msk.bf16.gmra.mrb[36].mxu0 %vm267_vm2, %v758_v28  ;;  %1808 = vmatprep.mubr.msk.bf16.mxu1 %vm1981_vm0, %v1980_v1  ;;  %v1193_v28 = vor.u32 %v1192_v24, %v1189_v23 }
  0x64   : > { %1826 = vmatprep.mubr.msk.bf16.mxu0 %vm1981_vm0, %v1980_v1 }
  0x65   : > { %v1194_v33 = vsel %vm1177_vm6, %v1185_v27, %v1193_v28 }
  0x6a   : > { %1809 = vmatmul.mubr.msk.bf16.gmra.mrb[40].mxu1 %vm267_vm2, %v618_v40  ;;  %v1205_v40 = vshrl.u32 %v2264_v6, 16 }
  0x6b   : > { %1827 = vmatmul.mubr.msk.bf16.gmra.mrb[40].mxu0 %vm267_vm2, %v767_v35  ;;  %1812 = vmatprep.mubr.msk.bf16.mxu1 %vm1981_vm0, %v1980_v1  ;;  %v1201_v35 = vrot.slane %v1199_v30, 3 }
  0x6c   : > { %1830 = vmatprep.mubr.msk.bf16.mxu0 %vm1981_vm0, %v1980_v1  ;;  %v1207_v46 = vrot.slane %v1205_v40, 2 }
  0x6d   : > { %v1202_v39 = vor.u32 %v1201_v35, %v1198_v34 }
  0x6f   : > { %v1203_v45 = vsel %vm1177_vm6, %v1193_v28, %v1202_v39 }
  0x72   : > { %1813 = vmatmul.mubr.msk.bf16.gmra.mrb[44].mxu1 %vm267_vm2, %v2088_v43  ;;  %v1962_v43 = vld [vmem:[%s2415_s1 + $0x38] sm:$0xff]  }
  0x73   : > { %1831 = vmatmul.mubr.msk.bf16.gmra.mrb[44].mxu0 %vm267_vm2, %v776_v41  ;;  %1840 = vmatprep.mubr.msk.bf16.mxu1 %vm1981_vm0, %v1980_v1  ;;  %v1210_v41 = vrot.slane %v1208_v42, 3 }
  0x74   : > { %1834 = vmatprep.mubr.msk.bf16.mxu0 %vm1981_vm0, %v1980_v1 }
  0x75   : > { %v1211_v48 = vor.u32 %v1210_v41, %v1207_v46 }
  0x77   : > { %v1212_v52 = vsel %vm1177_vm6, %v1202_v39, %v1211_v48  ;;  %v1221_v60 = vsel %vm1177_vm6, %v1211_v48, %v1220_v57 }
  0x7a   : > { %1841 = vmatmul.mubr.msk.bf16.vlgmr.msra.gmra.mrb[48].mxu1 %vm267_vm2, %v900_v58 }
  0x7b   : > { %1835 = vmatmul.mubr.msk.bf16.gmra.mrb[48].mxu0 %vm267_vm2, %v785_v55  ;;  %1883 = vmatpush3.bf16.msra.mxu1 %v1962_v43  ;;  %v1971_v55 = vld [vmem:[%s2027_s19 + $0x30] ss:$0 sps:$4 sm:$0x77]  }
  0x7c   : > { %1862 = vmatprep.mubr.msk.bf16.mxu0 %vm1981_vm0, %v1980_v1  ;;  %1844 = vmatprep.mubr.msk.bf16.mxu1 %vm1981_vm0, %v1980_v1  ;;  %v1223_v58 = vshrl.u32 %v1971_v55, 16  ;;  %v1226_v43 = vshll.u32 %v1971_v55, 16  ;;  %v1352_v4 = vrot.slane %v1971_v55, 3 }
  0x7e   : > { %v1225_v61 = vrot.slane %v1223_v58, 2 }
  0x82   : > { %1845 = vmatmul.mubr.msk.bf16.gmra.mrb[52].mxu1 %vm267_vm2, %v902_v2 }
  0x83   : > { %1863 = vmatmul.mubr.msk.bf16.vlgmr.msra.gmra.mrb[52].mxu0 %vm267_vm2, %v1057_v62  ;;  %1848 = vmatprep.mubr.msk.bf16.mxu1 %vm1981_vm0, %v1980_v1  ;;  %v1228_v62 = vrot.slane %v1226_v43, 3 }
  0x84   : > { %1905 = vmatpush3.bf16.msra.mxu0 %v1965_v63  ;;  %1866 = vmatprep.mubr.msk.bf16.mxu0 %vm1981_vm0, %v1980_v1  ;;  %v1350_v63 = vrot.slane %v2277_v12, 3 }
  0x85   : > { %v1229_v0 = vor.u32 %v1228_v62, %v1225_v61 }
  0x86   : > { %v1351_v2 = vsel %vm1342_vm7, %v1348_v56, %v1350_v63 }
  0x87   : > { %v1230_v3 = vsel %vm1177_vm6, %v1220_v57, %v1229_v0 }
  0x8a   : > { %1849 = vmatmul.mubr.msk.bf16.gmra.mrb[56].mxu1 %vm267_vm2, %v904_v7 }
  0x8b   : > { %1867 = vmatmul.mubr.msk.bf16.gmra.mrb[56].mxu0 %vm267_vm2, %v1059_v5  ;;  %1852 = vmatprep.mubr.msk.bf16.mxu1 %vm1981_vm0, %v1980_v1  ;;  %v1353_v5 = vsel %vm1342_vm7, %v1350_v63, %v1352_v4 }
  0x8c   : > { %1870 = vmatprep.mubr.msk.bf16.mxu0 %vm1981_vm0, %v1980_v1 }
  0x92   : > { %1853 = vmatmul.mubr.msk.bf16.gmra.mrb[60].mxu1 %vm267_vm2, %v906_v13 }
  0x93   : > { %1871 = vmatmul.mubr.msk.bf16.gmra.mrb[60].mxu0 %vm267_vm2, %v1061_v11  ;;  %1856 = vmatprep.mubr.msk.bf16.mxu1 %vm1981_vm0, %v1980_v1 }
  0x94   : > { %1874 = vmatprep.mubr.msk.bf16.mxu0 %vm1981_vm0, %v1980_v1 }
  0x9a   : > { %1857 = vmatmul.mubr.msk.bf16.gmra.mrb[64].mxu1 %vm267_vm2, %v908_v20 }
  0x9b   : > { %1875 = vmatmul.mubr.msk.bf16.gmra.mrb[64].mxu0 %vm267_vm2, %v1063_v18  ;;  %1884 = vmatprep.mubr.msk.bf16.mxu1 %vm1981_vm0, %v1980_v1 }
  0x9c   : > { %1878 = vmatprep.mubr.msk.bf16.mxu0 %vm1981_vm0, %v1980_v1 }
  0xa2   : > { %1885 = vmatmul.mubr.msk.bf16.vlgmr.msra.gmra.mrb[68].mxu1 %vm267_vm2, %v1194_v33 }
  0xa3   : > { %1879 = vmatmul.mubr.msk.bf16.gmra.mrb[68].mxu0 %vm267_vm2, %v1065_v31  ;;  %1888 = vmatprep.mubr.msk.bf16.mxu1 %vm1981_vm0, %v1980_v1 }
  0xa4   : > { %1906 = vmatprep.mubr.msk.bf16.mxu0 %vm1981_vm0, %v1980_v1 }
  0xaa   : > { %1889 = vmatmul.mubr.msk.bf16.gmra.mrb[72].mxu1 %vm267_vm2, %v1203_v45 }
  0xab   : > { %1907 = vmatmul.mubr.msk.bf16.vlgmr.msra.gmra.mrb[72].mxu0 %vm267_vm2, %v1345_v44  ;;  %1892 = vmatprep.mubr.msk.bf16.mxu1 %vm1981_vm0, %v1980_v1 }
  0xac   : > { %1910 = vmatprep.mubr.msk.bf16.mxu0 %vm1981_vm0, %v1980_v1 }
  0xb2   : > { %1893 = vmatmul.mubr.msk.bf16.gmra.mrb[76].mxu1 %vm267_vm2, %v1212_v52 }
  0xb3   : > { %1911 = vmatmul.mubr.msk.bf16.gmra.mrb[76].mxu0 %vm267_vm2, %v1347_v51  ;;  %1896 = vmatprep.mubr.msk.bf16.mxu1 %vm1981_vm0, %v1980_v1 }
  0xb4   : > { %1914 = vmatprep.mubr.msk.bf16.mxu0 %vm1981_vm0, %v1980_v1 }
  0xba   : > { %1897 = vmatmul.mubr.msk.bf16.gmra.mrb[80].mxu1 %vm267_vm2, %v1221_v60 }
  0xbb   : > { %1915 = vmatmul.mubr.msk.bf16.gmra.mrb[80].mxu0 %vm267_vm2, %v1349_v59  ;;  %1900 = vmatprep.mubr.msk.bf16.mxu1 %vm1981_vm0, %v1980_v1 }
  0xbc   : > { %1918 = vmatprep.mubr.msk.bf16.mxu0 %vm1981_vm0, %v1980_v1 }
  0xc2   : > { %1901 = vmatmul.mubr.msk.bf16.gmra.mrb[84].mxu1 %vm267_vm2, %v1230_v3 }
  0xc3   : > { %1919 = vmatmul.mubr.msk.bf16.gmra.mrb[84].mxu0 %vm267_vm2, %v1351_v2 }
  0xc4   : > { %1922 = vmatprep.mubr.msk.bf16.mxu0 %vm1981_vm0, %v1980_v1 }
  0xcb   : > { %1923 = vmatmul.mubr.msk.bf16.gmra.mrb[88].mxu0 %vm267_vm2, %v1353_v5 }
  0xed   : > { %v341_v9 = vpop.f32.mrb[0].mxu1 }
  0xee   : > { %v317_v6 = vpop.f32.mrb[0].mxu0  ;;  %v1744_v12 = vpop.f32.mrb[1].mxu1 }
  0xef   : > { %v1732_v7 = vpop.f32.mrb[1].mxu0  ;;  %v344_v13 = vpop.f32.mrb[2].mxu1 }
  0xf0   : > { %v320_v8 = vpop.f32.mrb[2].mxu0  ;;  %v1745_v10 = vpop.f32.mrb[3].mxu1 }
  0xf1   : > { %v1733_v11 = vpop.f32.mrb[3].mxu0 }
  0xf5   : > { %v349_v16 = vpop.f32.mrb[4].mxu1 }
  0xf6   : > { %v325_v14 = vpop.f32.mrb[4].mxu0  ;;  %v1748_v17 = vpop.f32.mrb[5].mxu1 }
  0xf7   : > { %v1736_v36 = vpop.f32.mrb[5].mxu0  ;;  %v352_v18 = vpop.f32.mrb[6].mxu1 }
  0xf8   : > { %v328_v15 = vpop.f32.mrb[6].mxu0  ;;  %v1749_v19 = vpop.f32.mrb[7].mxu1 }
  0xf9   : > { %v1737_v1 = vpop.f32.mrb[7].mxu0 }
  0xfd   : > { %v406_v22 = vpop.f32.mrb[8].mxu1 }
  0xfe   : > { %v333_v20 = vpop.f32.mrb[8].mxu0  ;;  %v407_v24 = vadd.f32 %v406_v22, %v317_v6  ;;  %v1754_v25 = vpop.f32.mrb[9].mxu1 }
  0xff   : > { %v1740_v21 = vpop.f32.mrb[9].mxu0  ;;  %v409_v27 = vpop.f32.mrb[10].mxu1 }
 0x100   : > { %v336_v23 = vpop.f32.mrb[10].mxu0  ;;  %v410_v28 = vadd.f32 %v409_v27, %v320_v8  ;;  %v1755_v29 = vpop.f32.mrb[11].mxu1 }
 0x101   : > { %v1741_v26 = vpop.f32.mrb[11].mxu0 }
 0x105   : > { %v414_v33 = vpop.f32.mrb[12].mxu1 }
 0x106   : > { %v519_v30 = vpop.f32.mrb[12].mxu0  ;;  %v415_v35 = vadd.f32 %v414_v33, %v325_v14  ;;  %v1758_v37 = vpop.f32.mrb[13].mxu1 }
 0x107   : > { %v558_v31 = vadd.f32 %v519_v30, %v407_v24  ;;  %v1776_v32 = vpop.f32.mrb[13].mxu0  ;;  %v417_v40 = vpop.f32.mrb[14].mxu1 }
 0x108   : > { %v522_v34 = vpop.f32.mrb[14].mxu0  ;;  %v418_v42 = vadd.f32 %v417_v40, %v328_v15  ;;  %v1759_v44 = vpop.f32.mrb[15].mxu1 }
 0x109   : > { %v559_v38 = vadd.f32 %v522_v34, %v410_v28  ;;  %v1777_v39 = vpop.f32.mrb[15].mxu0 }
 0x10d   : > { %v422_v47 = vpop.f32.mrb[16].mxu1 }
 0x10e   : > { %v527_v45 = vpop.f32.mrb[16].mxu0  ;;  %v423_v49 = vadd.f32 %v422_v47, %v333_v20  ;;  %v1762_v50 = vpop.f32.mrb[17].mxu1 }
 0x10f   : > { %v560_v46 = vadd.f32 %v527_v45, %v415_v35  ;;  %v1780_v41 = vpop.f32.mrb[17].mxu0  ;;  %v425_v53 = vpop.f32.mrb[18].mxu1 }
 0x110   : > { %v530_v48 = vpop.f32.mrb[18].mxu0  ;;  %v426_v54 = vadd.f32 %v425_v53, %v336_v23  ;;  %v1763_v55 = vpop.f32.mrb[19].mxu1 }
 0x111   : > { %v561_v51 = vadd.f32 %v530_v48, %v418_v42  ;;  %v1781_v52 = vpop.f32.mrb[19].mxu0 }
 0x115   : > { %v430_v43 = vpop.f32.mrb[20].mxu1 }
 0x116   : > { %v535_v56 = vpop.f32.mrb[20].mxu0  ;;  %v431_v60 = vadd.f32 %v430_v43, %v341_v9  ;;  %v1766_v61 = vpop.f32.mrb[21].mxu1 }
 0x117   : > { %v562_v57 = vadd.f32 %v535_v56, %v423_v49  ;;  %v1784_v58 = vpop.f32.mrb[21].mxu0  ;;  %v433_v0 = vpop.f32.mrb[22].mxu1 }
 0x118   : > { %v538_v59 = vpop.f32.mrb[22].mxu0  ;;  %v434_v2 = vadd.f32 %v433_v0, %v344_v13  ;;  %v1767_v3 = vpop.f32.mrb[23].mxu1 }
 0x119   : > { %v563_v62 = vadd.f32 %v538_v59, %v426_v54  ;;  %v1785_v63 = vpop.f32.mrb[23].mxu0 }
 0x11d   : > { %v438_v7 = vpop.f32.mrb[24].mxu1 }
 0x11e   : > { %v543_v4 = vpop.f32.mrb[24].mxu0  ;;  %v439_v11 = vadd.f32 %v438_v7, %v349_v16  ;;  %v1770_v12 = vpop.f32.mrb[25].mxu1 }
 0x11f   : > { %v564_v5 = vadd.f32 %v543_v4, %v431_v60  ;;  %v1788_v6 = vpop.f32.mrb[25].mxu0  ;;  %v441_v36 = vpop.f32.mrb[26].mxu1 }
 0x120   : > { %v546_v8 = vpop.f32.mrb[26].mxu0  ;;  %v442_v15 = vadd.f32 %v441_v36, %v352_v18  ;;  %v1771_v1 = vpop.f32.mrb[27].mxu1 }
 0x121   : > { %v565_v10 = vadd.f32 %v546_v8, %v434_v2  ;;  %v1789_v14 = vpop.f32.mrb[27].mxu0 }
 0x125   : > { %v676_v20 = vpop.f32.mrb[28].mxu1 }
 0x126   : > { %v551_v17 = vpop.f32.mrb[28].mxu0  ;;  %v715_v22 = vadd.f32 %v676_v20, %v558_v31  ;;  %v1798_v13 = vpop.f32.mrb[29].mxu1 }
 0x127   : > { %v566_v9 = vadd.f32 %v551_v17, %v439_v11  ;;  %v1792_v19 = vpop.f32.mrb[29].mxu0  ;;  %v679_v25 = vpop.f32.mrb[30].mxu1 }
 0x128   : > { %v554_v21 = vpop.f32.mrb[30].mxu0  ;;  %v716_v26 = vadd.f32 %v679_v25, %v559_v38  ;;  %v1799_v27 = vpop.f32.mrb[31].mxu1 }
 0x129   : > { %v567_v23 = vadd.f32 %v554_v21, %v442_v15  ;;  %v1793_v24 = vpop.f32.mrb[31].mxu0 }
 0x12d   : > { %v684_v30 = vpop.f32.mrb[32].mxu1 }
 0x12e   : > { %v841_v28 = vpop.f32.mrb[32].mxu0  ;;  %v717_v33 = vadd.f32 %v684_v30, %v560_v46  ;;  %v1802_v18 = vpop.f32.mrb[33].mxu1 }
 0x12f   : > { %v880_v16 = vadd.f32 %v841_v28, %v715_v22  ;;  %v1820_v29 = vpop.f32.mrb[33].mxu0  ;;  %v687_v37 = vpop.f32.mrb[34].mxu1 }
 0x130   : > { %v844_v32 = vpop.f32.mrb[34].mxu0  ;;  %v718_v39 = vadd.f32 %v687_v37, %v561_v51  ;;  %v1803_v40 = vpop.f32.mrb[35].mxu1 }
 0x131   : > { %v881_v34 = vadd.f32 %v844_v32, %v716_v26  ;;  %v1821_v35 = vpop.f32.mrb[35].mxu0 }
 0x135   : > { %v692_v45 = vpop.f32.mrb[36].mxu1 }
 0x136   : > { %v849_v42 = vpop.f32.mrb[36].mxu0  ;;  %v719_v47 = vadd.f32 %v692_v45, %v562_v57  ;;  %v1806_v38 = vpop.f32.mrb[37].mxu1 }
 0x137   : > { %v882_v31 = vadd.f32 %v849_v42, %v717_v33  ;;  %v1824_v44 = vpop.f32.mrb[37].mxu0  ;;  %v695_v50 = vpop.f32.mrb[38].mxu1 }
 0x138   : > { %v852_v41 = vpop.f32.mrb[38].mxu0  ;;  %v720_v52 = vadd.f32 %v695_v50, %v563_v62  ;;  %v1807_v53 = vpop.f32.mrb[39].mxu1 }
 0x139   : > { %v883_v48 = vadd.f32 %v852_v41, %v718_v39  ;;  %v1825_v49 = vpop.f32.mrb[39].mxu0 }
 0x13d   : > { %v700_v56 = vpop.f32.mrb[40].mxu1 }
 0x13e   : > { %v857_v54 = vpop.f32.mrb[40].mxu0  ;;  %v721_v43 = vadd.f32 %v700_v56, %v564_v5  ;;  %v1810_v51 = vpop.f32.mrb[41].mxu1 }
 0x13f   : > { %v884_v46 = vadd.f32 %v857_v54, %v719_v47  ;;  %v1828_v55 = vpop.f32.mrb[41].mxu0  ;;  %v703_v61 = vpop.f32.mrb[42].mxu1 }
 0x140   : > { %v860_v58 = vpop.f32.mrb[42].mxu0  ;;  %v722_v63 = vadd.f32 %v703_v61, %v565_v10  ;;  %v1811_v0 = vpop.f32.mrb[43].mxu1 }
 0x141   : > { %v885_v59 = vadd.f32 %v860_v58, %v720_v52  ;;  %v1829_v60 = vpop.f32.mrb[43].mxu0 }
 0x145   : > { %v708_v4 = vpop.f32.mrb[44].mxu1 }
 0x146   : > { %v865_v2 = vpop.f32.mrb[44].mxu0  ;;  %v723_v7 = vadd.f32 %v708_v4, %v566_v9  ;;  %v1814_v62 = vpop.f32.mrb[45].mxu1 }
 0x147   : > { %v886_v57 = vadd.f32 %v865_v2, %v721_v43  ;;  %v1832_v3 = vpop.f32.mrb[45].mxu0  ;;  %v711_v12 = vpop.f32.mrb[46].mxu1 }
 0x148   : > { %v868_v6 = vpop.f32.mrb[46].mxu0  ;;  %v724_v14 = vadd.f32 %v711_v12, %v567_v23  ;;  %v1815_v36 = vpop.f32.mrb[47].mxu1 }
 0x149   : > { %v887_v8 = vadd.f32 %v868_v6, %v722_v63  ;;  %v1833_v11 = vpop.f32.mrb[47].mxu0 }
 0x14d   : > { %v964_v17 = vpop.f32.mrb[48].mxu1 }
 0x14e   : > { %v873_v15 = vpop.f32.mrb[48].mxu0  ;;  %v1003_v20 = vadd.f32 %v964_v17, %v880_v16  ;;  %v1842_v10 = vpop.f32.mrb[49].mxu1 }
 0x14f   : > { %v888_v5 = vadd.f32 %v873_v15, %v723_v7  ;;  %v1836_v1 = vpop.f32.mrb[49].mxu0  ;;  %v967_v13 = vpop.f32.mrb[50].mxu1 }
 0x150   : > { %v876_v19 = vpop.f32.mrb[50].mxu0  ;;  %v1004_v24 = vadd.f32 %v967_v13, %v881_v34  ;;  %v1843_v25 = vpop.f32.mrb[51].mxu1 }
 0x151   : > { %v889_v21 = vadd.f32 %v876_v19, %v724_v14  ;;  %v1837_v22 = vpop.f32.mrb[51].mxu0 }
 0x155   : > { %v972_v28 = vpop.f32.mrb[52].mxu1 }
 0x156   : > { %v1121_v26 = vpop.f32.mrb[52].mxu0  ;;  %v1005_v30 = vadd.f32 %v972_v28, %v882_v31  ;;  %v1846_v23 = vpop.f32.mrb[53].mxu1 }
 0x157   : > { %v1160_v9 = vadd.f32 %v1121_v26, %v1003_v20  ;;  %v1864_v27 = vpop.f32.mrb[53].mxu0  ;;  %v975_v18 = vpop.f32.mrb[54].mxu1 }
 0x158   : > { %v1124_v29 = vpop.f32.mrb[54].mxu0  ;;  %v1006_v35 = vadd.f32 %v975_v18, %v883_v48  ;;  %v1847_v37 = vpop.f32.mrb[55].mxu1 }
 0x159   : > { %v1161_v32 = vadd.f32 %v1124_v29, %v1004_v24  ;;  %v1865_v33 = vpop.f32.mrb[55].mxu0 }
 0x15d   : > { %v980_v42 = vpop.f32.mrb[56].mxu1 }
 0x15e   : > { %v1129_v39 = vpop.f32.mrb[56].mxu0  ;;  %v1007_v45 = vadd.f32 %v980_v42, %v884_v46  ;;  %v1850_v34 = vpop.f32.mrb[57].mxu1 }
 0x15f   : > { %v1162_v16 = vadd.f32 %v1129_v39, %v1005_v30  ;;  %v1868_v40 = vpop.f32.mrb[57].mxu0  ;;  %v983_v38 = vpop.f32.mrb[58].mxu1 }
 0x160   : > { %v1132_v44 = vpop.f32.mrb[58].mxu0  ;;  %v1008_v49 = vadd.f32 %v983_v38, %v885_v59  ;;  %v1851_v50 = vpop.f32.mrb[59].mxu1 }
 0x161   : > { %v1163_v41 = vadd.f32 %v1132_v44, %v1006_v35  ;;  %v1869_v47 = vpop.f32.mrb[59].mxu0 }
 0x165   : > { %v988_v54 = vpop.f32.mrb[60].mxu1 }
 0x166   : > { %v1137_v52 = vpop.f32.mrb[60].mxu0  ;;  %v1009_v48 = vadd.f32 %v988_v54, %v886_v57  ;;  %v1854_v56 = vpop.f32.mrb[61].mxu1 }
 0x167   : > { %v2352_v31 = vadd.f32 %v1137_v52, %v1007_v45  ;;  %v1872_v53 = vpop.f32.mrb[61].mxu0  ;;  %v991_v51 = vpop.f32.mrb[62].mxu1 }
 0x168   : > { %v1140_v55 = vpop.f32.mrb[62].mxu0  ;;  %v1010_v60 = vadd.f32 %v991_v51, %v887_v8  ;;  %v1855_v46 = vpop.f32.mrb[63].mxu1 }
 0x169   : > { %v2354_v58 = vadd.f32 %v1140_v55, %v1008_v49  ;;  %v1873_v43 = vpop.f32.mrb[63].mxu0 }
 0x16d   : > { %v996_v59 = vpop.f32.mrb[64].mxu1 }
 0x16e   : > { %v1145_v61 = vpop.f32.mrb[64].mxu0  ;;  %v1011_v3 = vadd.f32 %v996_v59, %v888_v5  ;;  %v1858_v4 = vpop.f32.mrb[65].mxu1 }
 0x16f   : > { %v2356_v63 = vadd.f32 %v1145_v61, %v1009_v48  ;;  %v1876_v0 = vpop.f32.mrb[65].mxu0  ;;  %v999_v62 = vpop.f32.mrb[66].mxu1 }
 0x170   : > { %v1148_v2 = vpop.f32.mrb[66].mxu0  ;;  %v1012_v57 = vadd.f32 %v999_v62, %v889_v21  ;;  %v1859_v11 = vpop.f32.mrb[67].mxu1  ;;  %v2367_v21 = vld [vmem:[%s2416_s2] ss:$0 sm:$0xff] }
 0x171   : > { %v2358_v6 = vadd.f32 %v1148_v2, %v1010_v60  ;;  %v1877_v7 = vpop.f32.mrb[67].mxu0 }
 0x175   : > { %v1286_v36 = vpop.f32.mrb[68].mxu1 }
 0x176   : > { %v1153_v12 = vpop.f32.mrb[68].mxu0  ;;  %v1325_v1 = vadd.f32 %v1286_v36, %v1160_v9  ;;  %v1886_v17 = vpop.f32.mrb[69].mxu1 }
 0x177   : > { %v2360_v14 = vadd.f32 %v1153_v12, %v1011_v3  ;;  %v1880_v8 = vpop.f32.mrb[69].mxu0  ;;  %v1289_v5 = vpop.f32.mrb[70].mxu1 }
 0x178   : > { %v1156_v15 = vpop.f32.mrb[70].mxu0  ;;  %v1326_v10 = vadd.f32 %v1289_v5, %v1161_v32  ;;  %v1887_v22 = vpop.f32.mrb[71].mxu1 }
 0x179   : > { %v2362_v19 = vadd.f32 %v1156_v15, %v1012_v57  ;;  %v1881_v20 = vpop.f32.mrb[71].mxu0 }
 0x17d   : > { %v1294_v26 = vpop.f32.mrb[72].mxu1 }
 0x17e   : > { %v1409_v13 = vpop.f32.mrb[72].mxu0  ;;  %v1327_v28 = vadd.f32 %v1294_v26, %v1162_v16  ;;  %v1890_v29 = vpop.f32.mrb[73].mxu1 }
 0x17f   : > { %v1448_v24 = vadd.f32 %v1409_v13, %v1325_v1  ;;  %v1908_v25 = vpop.f32.mrb[73].mxu0  ;;  %v1297_v32 = vpop.f32.mrb[74].mxu1 }
 0x180   : > { %v1412_v27 = vpop.f32.mrb[74].mxu0  ;;  %v1328_v18 = vadd.f32 %v1297_v32, %v1163_v41  ;;  %v1891_v37 = vpop.f32.mrb[75].mxu1 }
 0x181   : > { %v1465_v9 = vadd.f32 %v2367_v21, %v1448_v24  ;;  %v1449_v30 = vadd.f32 %v1412_v27, %v1326_v10  ;;  %v1909_v23 = vpop.f32.mrb[75].mxu0 }
 0x183   : > { %vm1475_vm9 = vcmp.ge.f32.partialorder %v1465_v9, 0.0  ;;  %v1485_v33 = vmul.f32 0.01, %v1465_v9  ;;  %v1466_v35 = vadd.f32 %v2367_v21, %v1449_v30 }
 0x185   : > { %v1495_v39 = vsel %vm1475_vm9, %v1465_v9, %v1485_v33  ;;  %vm1476_vm10 = vcmp.ge.f32.partialorder %v1466_v35, 0.0  ;;  %v1486_v16 = vmul.f32 0.01, %v1466_v35  ;;  %v1302_v34 = vpop.f32.mrb[76].mxu1 }
 0x186   : > { %1506 = vst.msk [vmem:[%s2374_s16] sm:$0xff] %vm1505_vm8, %v1495_v39  ;;  %v1417_v40 = vpop.f32.mrb[76].mxu0  ;;  %v1329_v38 = vadd.f32 %v1302_v34, %v2352_v31  ;;  %v1894_v49 = vpop.f32.mrb[77].mxu1 }
 0x187   : > { %v1496_v42 = vsel %vm1476_vm10, %v1466_v35, %v1486_v16  ;;  %v1450_v44 = vadd.f32 %v1417_v40, %v1327_v28  ;;  %v1912_v45 = vpop.f32.mrb[77].mxu0  ;;  %v1305_v53 = vpop.f32.mrb[78].mxu1 }
 0x188   : > { %1507 = vst.msk [vmem:[%s2374_s16 + $0x8] sm:$0xff] %vm1505_vm8, %v1496_v42  ;;  %v1420_v47 = vpop.f32.mrb[78].mxu0  ;;  %v1330_v55 = vadd.f32 %v1305_v53, %v2354_v58  ;;  %v1895_v56 = vpop.f32.mrb[79].mxu1 }
 0x189   : > { %v1467_v41 = vadd.f32 %v2367_v21, %v1450_v44  ;;  %v1451_v50 = vadd.f32 %v1420_v47, %v1328_v18  ;;  %v1913_v52 = vpop.f32.mrb[79].mxu0 }
 0x18b   : > { %vm1477_vm11 = vcmp.ge.f32.partialorder %v1467_v41, 0.0  ;;  %v1487_v54 = vmul.f32 0.01, %v1467_v41  ;;  %v1468_v48 = vadd.f32 %v2367_v21, %v1451_v50 }
 0x18d   : > { %v1497_v43 = vsel %vm1477_vm11, %v1467_v41, %v1487_v54  ;;  %vm1478_vm12 = vcmp.ge.f32.partialorder %v1468_v48, 0.0  ;;  %v1488_v51 = vmul.f32 0.01, %v1468_v48  ;;  %v1310_v0 = vpop.f32.mrb[80].mxu1 }
 0x18e   : > { %1508 = vst.msk [vmem:[%s2374_s16 + $0x10] sm:$0xff] %vm1505_vm8, %v1497_v43  ;;  %v1425_v31 = vpop.f32.mrb[80].mxu0  ;;  %v1331_v2 = vadd.f32 %v1310_v0, %v2356_v63  ;;  %v1898_v3 = vpop.f32.mrb[81].mxu1 }
 0x18f   : > { %v1498_v60 = vsel %vm1478_vm12, %v1468_v48, %v1488_v51  ;;  %v1452_v46 = vadd.f32 %v1425_v31, %v1329_v38  ;;  %v1916_v61 = vpop.f32.mrb[81].mxu0  ;;  %v1313_v62 = vpop.f32.mrb[82].mxu1 }
 0x190   : > { %1509 = vst.msk [vmem:[%s2374_s16 + $0x18] sm:$0xff] %vm1505_vm8, %v1498_v60  ;;  %v1428_v59 = vpop.f32.mrb[82].mxu0  ;;  %v1332_v11 = vadd.f32 %v1313_v62, %v2358_v6  ;;  %v1899_v8 = vpop.f32.mrb[83].mxu1 }
 0x191   : > { %v1469_v58 = vadd.f32 %v2367_v21, %v1452_v46  ;;  %v1453_v4 = vadd.f32 %v1428_v59, %v1330_v55  ;;  %v1917_v7 = vpop.f32.mrb[83].mxu0 }
 0x193   : > { %vm1479_vm13 = vcmp.ge.f32.partialorder %v1469_v58, 0.0  ;;  %v1489_v57 = vmul.f32 0.01, %v1469_v58  ;;  %v1470_v12 = vadd.f32 %v2367_v21, %v1453_v4 }
 0x195   : > { %v1499_v36 = vsel %vm1479_vm13, %v1469_v58, %v1489_v57  ;;  %vm1480_vm14 = vcmp.ge.f32.partialorder %v1470_v12, 0.0  ;;  %v1490_v15 = vmul.f32 0.01, %v1470_v12  ;;  %v1318_v5 = vpop.f32.mrb[84].mxu1 }
 0x196   : > { %1510 = vst.msk [vmem:[%s2374_s16 + $0x20] sm:$0xff] %vm1505_vm8, %v1499_v36  ;;  %v1433_v63 = vpop.f32.mrb[84].mxu0  ;;  %v1333_v22 = vadd.f32 %v1318_v5, %v2360_v14  ;;  %v1902_v13 = vpop.f32.mrb[85].mxu1 }
 0x197   : > { %v1500_v1 = vsel %vm1480_vm14, %v1470_v12, %v1490_v15  ;;  %v1454_v17 = vadd.f32 %v1433_v63, %v1331_v2  ;;  %v1920_v20 = vpop.f32.mrb[85].mxu0  ;;  %v1321_v26 = vpop.f32.mrb[86].mxu1 }
 0x198   : > { %1511 = vst.msk [vmem:[%s2374_s16 + $0x28] sm:$0xff] %vm1505_vm8, %v1500_v1  ;;  %v1436_v10 = vpop.f32.mrb[86].mxu0  ;;  %v1334_v28 = vadd.f32 %v1321_v26, %v2362_v19  ;;  %v1903_v29 = vpop.f32.mrb[87].mxu1 }
 0x199   : > { %v1471_v6 = vadd.f32 %v2367_v21, %v1454_v17  ;;  %v1455_v24 = vadd.f32 %v1436_v10, %v1332_v11  ;;  %v1921_v25 = vpop.f32.mrb[87].mxu0 }
 0x19b   : > { %vm1481_vm15 = vcmp.ge.f32.partialorder %v1471_v6, 0.0  ;;  %v1491_v27 = vmul.f32 0.01, %v1471_v6  ;;  %v1472_v9 = vadd.f32 %v2367_v21, %v1455_v24 }
 0x19d   : > { %v1501_v30 = vsel %vm1481_vm15, %v1471_v6, %v1491_v27  ;;  %vm1482_vm0 = vcmp.ge.f32.partialorder %v1472_v9, 0.0  ;;  %v1492_v23 = vmul.f32 0.01, %v1472_v9 }
 0x19e   : > { %1512 = vst.msk [vmem:[%s2374_s16 + $0x30] sm:$0xff] %vm1505_vm8, %v1501_v30  ;;  %v1441_v14 = vpop.f32.mrb[88].mxu0 }
 0x19f   : > { %v1502_v32 = vsel %vm1482_vm0, %v1472_v9, %v1492_v23  ;;  %v1456_v33 = vadd.f32 %v1441_v14, %v1333_v22  ;;  %v1924_v18 = vpop.f32.mrb[89].mxu0 }
 0x1a0   : > { %1513 = vst.msk [vmem:[%s2374_s16 + $0x38] sm:$0xff] %vm1505_vm8, %v1502_v32  ;;  %v1444_v35 = vpop.f32.mrb[90].mxu0 }
 0x1a1   : > { %v1473_v37 = vadd.f32 %v2367_v21, %v1456_v33  ;;  %v1457_v19 = vadd.f32 %v1444_v35, %v1334_v28  ;;  %v1925_v39 = vpop.f32.mrb[91].mxu0 }
 0x1a3   : > { %vm1483_vm1 = vcmp.ge.f32.partialorder %v1473_v37, 0.0  ;;  %v1493_v16 = vmul.f32 0.01, %v1473_v37  ;;  %v1474_v40 = vadd.f32 %v2367_v21, %v1457_v19 }
 0x1a5   : > { %v1503_v42 = vsel %vm1483_vm1, %v1473_v37, %v1493_v16  ;;  %vm1484_vm2 = vcmp.ge.f32.partialorder %v1474_v40, 0.0  ;;  %v1494_v44 = vmul.f32 0.01, %v1474_v40 }
 0x1a6   : > { %1514 = vst.msk [vmem:[%s2374_s16 + $0x40] sm:$0xff] %vm1505_vm8, %v1503_v42 }
 0x1a7   : > { %v1504_v45 = vsel %vm1484_vm2, %v1474_v40, %v1494_v44 }
 0x1a8   : > { %1515 = vst.msk [vmem:[%s2374_s16 + $0x48] sm:$0xff] %vm1505_vm8, %v1504_v45 }
 0x1a9 PF: > { %s13_s12 = sadd.s32 1, %s1978_s12  }
 0x1aa   : > { %p10_p4 = scmp.ge.s32.totalorder %s13_s12, 4  }
 0x1ac   :  { %12 = sbr.rel (!%p10_p4) target bundleno = 1 (0x1), region = 70 }

</bundles_post_ra>
